<compile_context>
chip_gen: v7x
topology: tpu7x:2x2x1
jax: 0.10.0
libtpu: 0.0.40
codegen_flags: <defaults>
</compile_context>

<pallas_src>
import jax
import jax.numpy as jnp
from jax.experimental import pallas as pl
from jax.experimental.pallas import tpu as pltpu


def _round_up(n, m):
    return ((n + m - 1) // m) * m


# ----------------------------------------------------------------------------
# Kernel: one batch tile per grid step.
#   x_ref  : (TB, F)   f32
#   w1_ref : (F, Hp)   bf16   (BN already folded in)
#   b1_ref : (1, Hp)   f32    (BN already folded in)
#   w2_ref : (Hp, Pp)  bf16
#   b2_ref : (1, Pp)   f32
#   a_ref  : (1,)      f32    (PReLU slope, SMEM)
#   out_ref: (TB, Pp)  f32
# ----------------------------------------------------------------------------
def fcn_kernel(x_ref, w1_ref, b1_ref, w2_ref, b2_ref, a_ref, out_ref):
    # ---- Linear #1 (BN folded in): bf16 MXU inputs, f32 accumulation ----
    x = x_ref[...].astype(jnp.bfloat16)
    h = jnp.dot(x, w1_ref[...], preferred_element_type=jnp.float32)  # (TB, Hp) f32
    h = h + b1_ref[...]                                              # f32 VPU

    # ---- PReLU (single shared slope, read from SMEM) ----
    alpha = a_ref[0]
    h = jnp.where(h >= 0, h, alpha * h)

    # ---- Dropout: eval mode => identity ----
    # TODO(synk): training-mode dropout (random Bernoulli mask) not implemented.

    # ---- Linear #2: bf16 MXU inputs, f32 accumulation ----
    out = jnp.dot(h.astype(jnp.bfloat16), w2_ref[...],
                  preferred_element_type=jnp.float32)                # (TB, Pp)
    out = out + b2_ref[...]
    out_ref[...] = out.astype(out_ref.dtype)


# ----------------------------------------------------------------------------
# Parameter prep: fold BatchNorm into Linear #1, pad H -> mult of 128,
# P -> mult of 128, cast weights to bf16.  Done ONCE, outside the kernel.
# ----------------------------------------------------------------------------
def fold_params(params, eps=1e-5):
    w1, b1 = params["w1"], params["b1"]            # (F, H), (1, H)
    gamma, beta = params["gamma"], params["beta"]  # (1, H)
    mean, var = params["mean"], params["var"]      # (1, H)
    w2, b2 = params["w2"], params["b2"]            # (H, P), (1, P)

    scale = gamma * jax.lax.rsqrt(var + eps)       # (1, H)
    w1f = w1 * scale                               # fold BN scale into weights
    b1f = (b1 - mean) * scale + beta               # fold BN shift into bias

    F, H = w1.shape
    P = w2.shape[1]
    Hp = _round_up(H, 128)
    Pp = _round_up(P, 128)

    # Zero padding: extra H lanes give h == 0 -> PReLU(0) == 0 -> contribute
    # nothing to the second matmul; extra P lanes are sliced off after the call.
    w1f = jnp.pad(w1f, ((0, 0), (0, Hp - H)))
    b1f = jnp.pad(b1f, ((0, 0), (0, Hp - H)))
    w2f = jnp.pad(w2, ((0, Hp - H), (0, Pp - P)))
    b2f = jnp.pad(b2, ((0, 0), (0, Pp - P)))

    return {
        "w1": w1f.astype(jnp.bfloat16),
        "b1": b1f.astype(jnp.float32),
        "w2": w2f.astype(jnp.bfloat16),
        "b2": b2f.astype(jnp.float32),
        "a": params["a"].reshape(-1)[:1].astype(jnp.float32),   # (1,) scalar
    }


# ----------------------------------------------------------------------------
# Wrapper: batch-tiled pallas_call.
# ----------------------------------------------------------------------------
def fcn_forward(x, fp, num_phonemes, *, tb=1024):
    """x: (B, F) f32, fp: output of fold_params, num_phonemes: true P."""
    B, F = x.shape
    Hp = fp["w1"].shape[1]
    Pp = fp["w2"].shape[1]

    # Batch tile: cap at `tb` (sized for v7x's 64 MiB VMEM with double
    # buffering), align to the 8-row sublane granule when possible.
    TB = min(tb, B)
    if TB >= 8:
        TB = (TB // 8) * 8
    Bp = _round_up(B, TB)
    xp = jnp.pad(x, ((0, Bp - B), (0, 0))) if Bp != B else x

    grid = (Bp // TB,)

    flops = 2 * Bp * (F * Hp + Hp * Pp)
    bytes_accessed = 4 * (Bp * F + Bp * Pp) + 2 * (F * Hp + Hp * Pp)

    out = pl.pallas_call(
        fcn_kernel,
        out_shape=jax.ShapeDtypeStruct((Bp, Pp), x.dtype),
        grid=grid,
        in_specs=[
            pl.BlockSpec((TB, F), lambda i: (i, 0)),    # x: pipelined over batch
            pl.BlockSpec((F, Hp), lambda i: (0, 0)),    # w1: VMEM-resident
            pl.BlockSpec((1, Hp), lambda i: (0, 0)),    # b1
            pl.BlockSpec((Hp, Pp), lambda i: (0, 0)),   # w2
            pl.BlockSpec((1, Pp), lambda i: (0, 0)),    # b2
            pl.BlockSpec(memory_space=pltpu.MemorySpace.SMEM),  # PReLU slope
        ],
        out_specs=pl.BlockSpec((TB, Pp), lambda i: (i, 0)),     # lane-dense store
        compiler_params=pltpu.CompilerParams(
            dimension_semantics=("parallel",)),
        cost_estimate=pl.CostEstimate(
            flops=flops, transcendentals=0, bytes_accessed=bytes_accessed),
    )(xp, fp["w1"], fp["b1"], fp["w2"], fp["b2"], fp["a"])

    return out[:B, :num_phonemes]


# ----------------------------------------------------------------------------
# Parameter init (matches PyTorch defaults) + pure-JAX f32 reference.
# ----------------------------------------------------------------------------
def init_params(key, num_features, num_neurons, num_phonemes):
    ks = jax.random.split(key, 8)
    bound1 = 1.0 / jnp.sqrt(num_features)
    bound2 = 1.0 / jnp.sqrt(num_neurons)
    return {
        "w1": jax.random.uniform(ks[0], (num_features, num_neurons),
                                 jnp.float32, -bound1, bound1),
        "b1": jax.random.uniform(ks[1], (1, num_neurons),
                                 jnp.float32, -bound1, bound1),
        "gamma": jax.random.uniform(ks[2], (1, num_neurons), jnp.float32, 0.5, 1.5),
        "beta": jax.random.uniform(ks[3], (1, num_neurons), jnp.float32, -0.5, 0.5),
        "mean": jax.random.uniform(ks[4], (1, num_neurons), jnp.float32, -0.5, 0.5),
        "var": jax.random.uniform(ks[5], (1, num_neurons), jnp.float32, 0.5, 1.5),
        "a": jnp.full((1, 1), 0.25, jnp.float32),   # PReLU default
        "w2": jax.random.uniform(ks[6], (num_neurons, num_phonemes),
                                 jnp.float32, -bound2, bound2),
        "b2": jax.random.uniform(ks[7], (1, num_phonemes),
                                 jnp.float32, -bound2, bound2),
    }


def fcn_reference(x, p):
    h = x @ p["w1"] + p["b1"]
    scale = p["gamma"] * jax.lax.rsqrt(p["var"] + 1e-5)
    h = h * scale + (p["beta"] - p["mean"] * scale)
    h = jnp.where(h >= 0, h, p["a"] * h)
    return h @ p["w2"] + p["b2"]


if __name__ == "__main__":
    # args.num_features = 40, num_neurons = 500, args.num_phonemes = 46
    B, F, H, P = 8, 40, 500, 46
    key = jax.random.PRNGKey(0)
    kx, kp = jax.random.split(key)

    x = jax.random.normal(kx, (B, F), jnp.float32)
    params = init_params(kp, F, H, P)
    folded = fold_params(params)

    out = fcn_forward(x, folded, P)
    out = jax.block_until_ready(out)

    ref = fcn_reference(x, params)
    assert out.shape == (B, P)
    # bf16 MXU inputs with f32 accumulation -> small relative error vs f32 ref.
    assert jnp.allclose(out, ref, atol=3e-2, rtol=3e-2), (
        float(jnp.max(jnp.abs(out - ref))))

    print("KERNEL_OK")
</pallas_src>

<mosaic_0001>
module attributes {stable_mosaic.version = 11 : i64} {
  func.func @fcn_kernel(%arg0: i32, %arg1: memref<8x40xf32, #tpu.memory_space<vmem>>, %arg2: memref<40x512xbf16, #tpu.memory_space<vmem>>, %arg3: memref<1x512xf32, #tpu.memory_space<vmem>>, %arg4: memref<512x128xbf16, #tpu.memory_space<vmem>>, %arg5: memref<1x128xf32, #tpu.memory_space<vmem>>, %arg6: memref<1xf32, #tpu.memory_space<smem>>, %arg7: memref<8x128xf32, #tpu.memory_space<vmem>>) attributes {dimension_semantics = [#tpu.dimension_semantics<parallel>], iteration_bounds = array<i64: 1>, scalar_prefetch = 0 : i64, scratch_operands = 0 : i64, tpu.core_type = #tpu.core_type<tc>, window_params = [{transform_indices = @transform_0, window_bounds = array<i64: 8, 40>}, {pipeline_mode = #tpu.pipeline_mode<synchronous>, transform_indices = @transform_1, window_bounds = array<i64: 40, 512>}, {pipeline_mode = #tpu.pipeline_mode<synchronous>, transform_indices = @transform_2, window_bounds = array<i64: 1, 512>}, {pipeline_mode = #tpu.pipeline_mode<synchronous>, transform_indices = @transform_3, window_bounds = array<i64: 512, 128>}, {pipeline_mode = #tpu.pipeline_mode<synchronous>, transform_indices = @transform_4, window_bounds = array<i64: 1, 128>}, {transform_indices = @transform_5, window_bounds = array<i64: 1>}, {transform_indices = @transform_6, window_bounds = array<i64: 8, 128>}]} {
    %c0 = arith.constant 0 : index
    %c0_0 = arith.constant 0 : index
    %0 = vector.load %arg1[%c0, %c0_0] : memref<8x40xf32, #tpu.memory_space<vmem>>, vector<8x40xf32>
    %1 = arith.truncf %0 : vector<8x40xf32> to vector<8x40xbf16>
    %c0_1 = arith.constant 0 : index
    %c0_2 = arith.constant 0 : index
    %2 = vector.load %arg2[%c0_1, %c0_2] : memref<40x512xbf16, #tpu.memory_space<vmem>>, vector<40x512xbf16>
    %cst = arith.constant dense<0.000000e+00> : vector<8x512xf32>
    %3 = tpu.matmul %1, %2, %cst {dimension_numbers = #tpu.dot_dimension_numbers<[1], [0], [0], [1], [0, 0, 1, 1], [], []>} : vector<8x40xbf16>, vector<40x512xbf16>, vector<8x512xf32> -> vector<8x512xf32>
    %c0_3 = arith.constant 0 : index
    %c0_4 = arith.constant 0 : index
    %4 = vector.load %arg3[%c0_3, %c0_4] : memref<1x512xf32, #tpu.memory_space<vmem>>, vector<1x512xf32>
    %5 = vector.broadcast %4 : vector<1x512xf32> to vector<8x512xf32>
    %6 = arith.addf %3, %5 : vector<8x512xf32>
    %c0_5 = arith.constant 0 : index
    %7 = memref.load %arg6[%c0_5] : memref<1xf32, #tpu.memory_space<smem>>
    %cst_6 = arith.constant 0.000000e+00 : f32
    %8 = vector.broadcast %cst_6 : f32 to vector<8x512xf32>
    %9 = arith.cmpf oge, %6, %8 : vector<8x512xf32>
    %10 = vector.broadcast %7 : f32 to vector<8x512xf32>
    %11 = arith.mulf %10, %6 : vector<8x512xf32>
    %12 = arith.select %9, %6, %11 : vector<8x512xi1>, vector<8x512xf32>
    %13 = arith.truncf %12 : vector<8x512xf32> to vector<8x512xbf16>
    %c0_7 = arith.constant 0 : index
    %c0_8 = arith.constant 0 : index
    %14 = vector.load %arg4[%c0_7, %c0_8] : memref<512x128xbf16, #tpu.memory_space<vmem>>, vector<512x128xbf16>
    %cst_9 = arith.constant dense<0.000000e+00> : vector<8x128xf32>
    %15 = tpu.matmul %13, %14, %cst_9 {dimension_numbers = #tpu.dot_dimension_numbers<[1], [0], [0], [1], [0, 0, 1, 1], [], []>} : vector<8x512xbf16>, vector<512x128xbf16>, vector<8x128xf32> -> vector<8x128xf32>
    %c0_10 = arith.constant 0 : index
    %c0_11 = arith.constant 0 : index
    %16 = vector.load %arg5[%c0_10, %c0_11] : memref<1x128xf32, #tpu.memory_space<vmem>>, vector<1x128xf32>
    %17 = vector.broadcast %16 : vector<1x128xf32> to vector<8x128xf32>
    %18 = arith.addf %15, %17 : vector<8x128xf32>
    %c0_12 = arith.constant 0 : index
    %c0_13 = arith.constant 0 : index
    %19 = vector.load %arg7[%c0_12, %c0_13] : memref<8x128xf32, #tpu.memory_space<vmem>>, vector<8x128xf32>
    tpu.vector_store %arg7[%c0_12, %c0_13], %18 {strides = array<i32>} : memref<8x128xf32, #tpu.memory_space<vmem>>, vector<8x128xf32>,
    return
  }
  func.func @transform_0(%arg0: i32) -> (i32, i32) {
    %c0_i32 = arith.constant 0 : i32
    %c0_i32_0 = arith.constant 0 : i32
    return %arg0, %c0_i32 : i32, i32
  }
  func.func @transform_1(%arg0: i32) -> (i32, i32) {
    %c0_i32 = arith.constant 0 : i32
    %c0_i32_0 = arith.constant 0 : i32
    %c0_i32_1 = arith.constant 0 : i32
    return %c0_i32, %c0_i32_0 : i32, i32
  }
  func.func @transform_2(%arg0: i32) -> (i32, i32) {
    %c0_i32 = arith.constant 0 : i32
    %c0_i32_0 = arith.constant 0 : i32
    %c0_i32_1 = arith.constant 0 : i32
    return %c0_i32, %c0_i32_0 : i32, i32
  }
  func.func @transform_3(%arg0: i32) -> (i32, i32) {
    %c0_i32 = arith.constant 0 : i32
    %c0_i32_0 = arith.constant 0 : i32
    %c0_i32_1 = arith.constant 0 : i32
    return %c0_i32, %c0_i32_0 : i32, i32
  }
  func.func @transform_4(%arg0: i32) -> (i32, i32) {
    %c0_i32 = arith.constant 0 : i32
    %c0_i32_0 = arith.constant 0 : i32
    %c0_i32_1 = arith.constant 0 : i32
    return %c0_i32, %c0_i32_0 : i32, i32
  }
  func.func @transform_5(%arg0: i32) -> i32 {
    %c0_i32 = arith.constant 0 : i32
    %c0_i32_0 = arith.constant 0 : i32
    return %c0_i32 : i32
  }
  func.func @transform_6(%arg0: i32) -> (i32, i32) {
    %c0_i32 = arith.constant 0 : i32
    %c0_i32_0 = arith.constant 0 : i32
    return %arg0, %c0_i32 : i32, i32
  }
}

</mosaic_0001>

<bundles_post_ra>
// kernel: tpu_custom_call.1
= control target key start
LH: loop header
LB: loop body
LE: loop exit
PB: predicated region body
PF: predicated region fallthrough
CT: control target
= control target key end

     0   :  { %12 = vsyncpa [#allocation4], 0  ;;  %s971_s0 = inlined_call_operand.hbm [shape: f32[8,40], index: 0, kind: input, shape index: {}]   ;;  %s972_s1 = inlined_call_operand.hbm [shape: bf16[40,512], index: 1, kind: input, shape index: {}]   ;;  %s973_s2 = inlined_call_operand.vmem [shape: f32[1,512], index: 2, kind: input, shape index: {}]   ;;  %s974_s3 = inlined_call_operand.hbm [shape: bf16[512,128], index: 3, kind: input, shape index: {}]   ;;  %s975_s4 = inlined_call_operand.vmem [shape: f32[1,128], index: 4, kind: input, shape index: {}]   ;;  %s976_s5 = inlined_call_operand.<no memory space> [shape: f32[1], index: 5, kind: input, shape index: {}]   ;;  %s977_s6 = inlined_call_operand.hbm [shape: f32[8,128], index: 6, kind: output, shape index: {}]  }
   0x1   :  { %13 = vsyncpa [#allocation7], 0 }
   0x2   :  { %14 = vsyncpa [#allocation5], 0  ;;  %s870_s21 = smov [#allocation6]   ;;  %s776_s25 = scalar_lea.hbm %s972_s1, 1280 }
   0x3   :  { %s30_s22 = sshll.u32 %s870_s21, 4  ;;  %p777_p0 = scmp.ne.s32.totalorder %s972_s1, %s776_s25  ;;  %s31_s22 = int_to_ptr.vmem [resolvable:$true] %s30_s22 }
   0x4   :  { %p780_p1 = scmp.lt.u32.totalorder %s776_s25, %s972_s1 }
   0x6   :  { %p782_p2 = pnand %p780_p1, %p777_p0 }
   0x8   :  { %785 = shalt.err (!%p782_p2)
}
   0x9   :  { %s786_s30 = scalar_lea.vmem %s31_s22, 1280  ;;  %p791_p4 = scmp.lt.s32.totalorder %s31_s22, %s31_s22 }
   0xa   :  { %p787_p3 = scmp.ne.s32.totalorder %s31_s22, %s786_s30  ;;  %p792_p5 = scmp.lt.s32.totalorder %s786_s30, %s786_s30 }
   0xc   :  { %p793_p6 = por %p792_p5, %p791_p4 }
   0xe   :  { %p794_p7 = pnand %p793_p6, %p787_p3 }
  0x10   :  { %797 = shalt.err (!%p794_p7)
}
  0x11   :  { %s871_s7 = smov 256   ;;  %s872_s8 = smov 16  }
  0x12   :  { %36 = dma.hbm_to_vmem [thread:$0]  %s972_s1, 1280, %s31_s22, [#allocation7], %s871_s7, %s871_s7, %s872_s8  }
  0x13   :  { %s873_s11 = smov [#allocation3]   ;;  %s874_s13 = smov [#allocation8]  }
  0x14   :  { %s21_s12 = sshll.u32 %s873_s11, 4  ;;  %s44_s14 = sshll.u32 %s874_s13, 4  ;;  %s22_s12 = int_to_ptr.vmem [resolvable:$true] %s21_s12  ;;  %s45_s14 = int_to_ptr.vmem [resolvable:$true] %s44_s14 }
  0x15   :  { %s798_s17 = scalar_lea.hbm %s971_s0, 128 }
  0x16   :  { %p799_p8 = scmp.ne.s32.totalorder %s971_s0, %s798_s17  ;;  %p802_p9 = scmp.lt.u32.totalorder %s798_s17, %s971_s0 }
  0x18   :  { %p804_p10 = pnand %p802_p9, %p799_p8 }
  0x1a   :  { %807 = shalt.err (!%p804_p10)
}
  0x1b   :  { %s808_s1 = scalar_lea.vmem %s22_s12, 128  ;;  %p813_p12 = scmp.lt.s32.totalorder %s22_s12, %s22_s12 }
  0x1c   :  { %p809_p11 = scmp.ne.s32.totalorder %s22_s12, %s808_s1  ;;  %p814_p13 = scmp.lt.s32.totalorder %s808_s1, %s808_s1 }
  0x1e   :  { %p815_p0 = por %p814_p13, %p813_p12 }
  0x20   :  { %p816_p1 = pnand %p815_p0, %p809_p11 }
  0x22   :  { %819 = shalt.err (!%p816_p1)
}
  0x23   :  { %24 = dma.hbm_to_vmem [thread:$0]  %s971_s0, 128, %s22_s12, [#allocation4]  }
  0x24   :  { %s820_s26 = scalar_lea.hbm %s974_s3, 4096 }
  0x25   :  { %p821_p2 = scmp.ne.s32.totalorder %s974_s3, %s820_s26  ;;  %p824_p3 = scmp.lt.u32.totalorder %s820_s26, %s974_s3 }
  0x27   :  { %p826_p4 = pnand %p824_p3, %p821_p2 }
  0x29   :  { %829 = shalt.err (!%p826_p4)
}
  0x2a   :  { %s830_s7 = scalar_lea.vmem %s45_s14, 4096  ;;  %p835_p6 = scmp.lt.s32.totalorder %s45_s14, %s45_s14 }
  0x2b   :  { %p831_p5 = scmp.ne.s32.totalorder %s45_s14, %s830_s7  ;;  %p836_p7 = scmp.lt.s32.totalorder %s830_s7, %s830_s7 }
  0x2d   :  { %p837_p8 = por %p836_p7, %p835_p6 }
  0x2f   :  { %p838_p9 = pnand %p837_p8, %p831_p5 }
  0x31   :  { %841 = shalt.err (!%p838_p9)
}
  0x32   :  { %s875_s0 = smov 64   ;;  %s876_s8 = smov 4  }
  0x33   :  { %50 = dma.hbm_to_vmem [thread:$0]  %s974_s3, 4096, %s45_s14, [#allocation7], %s875_s0, %s875_s0, %s876_s8  }
  0x34   :  { %864 = dma.done.wait [#allocation4], 128  }
  0x35   :  { %865 = vsyncadd [#allocation4], 4294967168 }
  0x36   :  { %866 = dma.done.wait [#allocation7], 5376  }
  0x37   :  { %867 = vsyncadd [#allocation7], 4294961920  ;;  %v877_v0 = vmov 0   ;;  %v728_v1 = vld [vmem:[#allocation6 + $0x4] ss:$16 sps:$4 sm:$0xff]   ;;  %vm153_vm0 = vcmask 1043456   ;;  %v79_v51 = vlaneseq  ;;  %v253_v63 = vstv %s976_s5 }
  0x38   :  { %198 = vmatprep.mubr.bf16.mxu0 %v877_v0  ;;  %239 = vmatprep.mubr.bf16.mxu1 %v877_v0  ;;  %v730_v2 = vld [vmem:[#allocation6 + $0xc] ss:$16 sps:$4 sm:$0xff]   ;;  %v732_v3 = vld [vmem:[#allocation6] ss:$16 sps:$4 sm:$0xff]   ;;  %v733_v4 = vld [vmem:[#allocation6 + $0x8] ss:$16 sps:$4 sm:$0xff]  }
  0x39   :  { %166 = vmatprep.subr.bf16.mxu0 %v728_v1  ;;  %207 = vmatprep.subr.bf16.mxu1 %v730_v2  ;;  %v734_v5 = vld [vmem:[#allocation6 + $0x24] ss:$16 sps:$4 sm:$0xff]   ;;  %v736_v6 = vld [vmem:[#allocation6 + $0x2c] ss:$16 sps:$4 sm:$0xff]   ;;  %v738_v7 = vld [vmem:[#allocation6 + $0x20] ss:$16 sps:$4 sm:$0xff]  }
  0x3a   :  { %167 = vmatpush1.bf16.msra.mxu0 %v732_v3  ;;  %208 = vmatpush1.bf16.msra.mxu1 %v733_v4  ;;  %v739_v8 = vld [vmem:[#allocation6 + $0x28] ss:$16 sps:$4 sm:$0xff]   ;;  %v75_v9 = vld [vmem:[#allocation6 + $0x40] sm:$0xff]  ;;  %v744_v18 = vld [vmem:[#allocation8 + $0x40] sm:$0xff]   ;;  %vm149_vm1 = vcmask 326656   ;;  %v80_v52 = vshrl.u32 %v79_v51, 7 }
  0x3b   :  { %168 = vmatprep.subr.bf16.mxu0 %v734_v5  ;;  %v76_v10 = vld [vmem:[#allocation6 + $0x48] sm:$0xff]  ;;  %209 = vmatprep.subr.bf16.mxu1 %v736_v6  ;;  %v635_v11 = vcombine.high %v75_v9, %v75_v9  ;;  %v634_v13 = vcombine.low %v75_v9, %v75_v9  ;;  %v65_v15 = vld [vmem:[#allocation3] sm:$0xff]  ;;  %v745_v19 = vld [vmem:[#allocation8 + $0xc0] sm:$0xff]   ;;  %s878_s14 = smov [#allocation9]  }
  0x3c   :  { %v637_v12 = vcombine.high %v76_v10, %v76_v10  ;;  %v636_v14 = vcombine.low %v76_v10, %v76_v10  ;;  %v746_v20 = vld [vmem:[#allocation8] sm:$0xff]   ;;  %v66_v21 = vpack.c.bf16 %v65_v15, %v65_v15  ;;  %v748_v23 = vld [vmem:[#allocation8 + $0x48] sm:$0xff]   ;;  %v752_v27 = vld [vmem:[#allocation8 + $0x50] sm:$0xff]   ;;  %v81_v53 = vsub.s32 0, %v80_v52  ;;  %s616_s15 = sshll.u32 %s878_s14, 4  ;;  %s617_s15 = int_to_ptr.vmem [resolvable:$true] %s616_s15 }
  0x3d   :  { %v155_v16 = vsel %vm153_vm0, %v634_v13, 0  ;;  %v747_v22 = vld [vmem:[#allocation8 + $0x80] sm:$0xff]   ;;  %v749_v24 = vld [vmem:[#allocation8 + $0xc8] sm:$0xff]   ;;  %v753_v28 = vld [vmem:[#allocation8 + $0xd0] sm:$0xff]   ;;  %v89_v54 = vsub.s32 2, %v80_v52  ;;  %v85_v56 = vsub.s32 1, %v80_v52  ;;  %p847_p11 = scmp.lt.s32.totalorder %s617_s15, %s617_s15 }
  0x3e   :  { %169 = vmatpush1.bf16.msra.mxu0 %v738_v7  ;;  %210 = vmatpush1.bf16.msra.mxu1 %v739_v8  ;;  %v161_v17 = vsel %vm153_vm0, %v636_v14, 0  ;;  %v750_v25 = vld [vmem:[#allocation8 + $0x8] sm:$0xff]   ;;  %v754_v29 = vld [vmem:[#allocation8 + $0x10] sm:$0xff]   ;;  %v756_v31 = vld [vmem:[#allocation8 + $0x58] sm:$0xff]   ;;  %v93_v57 = vsub.s32 3, %v80_v52  ;;  %s842_s16 = scalar_lea.vmem %s617_s15, 128 }
  0x3f   :  { %638 = vmatprep.subr.msk.bf16.mxu0 %vm153_vm0, %v635_v11  ;;  %640 = vmatprep.subr.msk.bf16.mxu1 %vm153_vm0, %v637_v12  ;;  %v751_v26 = vld [vmem:[#allocation8 + $0x88] sm:$0xff]   ;;  %v755_v30 = vld [vmem:[#allocation8 + $0x90] sm:$0xff]   ;;  %v757_v32 = vld [vmem:[#allocation8 + $0xd8] sm:$0xff]   ;;  %p843_p10 = scmp.ne.s32.totalorder %s617_s15, %s842_s16  ;;  %p848_p12 = scmp.lt.s32.totalorder %s842_s16, %s842_s16 }
  0x40   :  { %v758_v33 = vld [vmem:[#allocation8 + $0x18] sm:$0xff]   ;;  %v760_v35 = vld [vmem:[#allocation8 + $0x60] sm:$0xff]   ;;  %v764_v39 = vld [vmem:[#allocation8 + $0x68] sm:$0xff]  }
  0x41   :  { %v759_v34 = vld [vmem:[#allocation8 + $0x98] sm:$0xff]   ;;  %v761_v36 = vld [vmem:[#allocation8 + $0xe0] sm:$0xff]   ;;  %v765_v40 = vld [vmem:[#allocation8 + $0xe8] sm:$0xff]   ;;  %p849_p13 = por %p848_p12, %p847_p11 }
  0x42   :  { %171 = vmatpush1.bf16.msra.mxu0 %v155_v16  ;;  %212 = vmatpush1.bf16.msra.mxu1 %v161_v17  ;;  %v762_v37 = vld [vmem:[#allocation8 + $0x20] sm:$0xff]   ;;  %v766_v41 = vld [vmem:[#allocation8 + $0x28] sm:$0xff]   ;;  %v768_v43 = vld [vmem:[#allocation8 + $0x70] sm:$0xff]  }
  0x43   :  { %675 = vmatprep.subr.bf16.mxu0 %v744_v18  ;;  %697 = vmatprep.subr.bf16.mxu1 %v745_v19  ;;  %v763_v38 = vld [vmem:[#allocation8 + $0xa0] sm:$0xff]   ;;  %v767_v42 = vld [vmem:[#allocation8 + $0xa8] sm:$0xff]   ;;  %v769_v44 = vld [vmem:[#allocation8 + $0xf0] sm:$0xff]   ;;  %p850_p0 = pnand %p849_p13, %p843_p10 }
  0x44   :  { %v770_v45 = vld [vmem:[#allocation8 + $0x30] sm:$0xff]   ;;  %v772_v47 = vld [vmem:[#allocation8 + $0x78] sm:$0xff]   ;;  %v77_v55 = vld [vmem:[%s973_s2] sm:$0xf] }
  0x45   :  { %639 = vmatmul.mubr.msk.bf16.vlgmr.msra.gmra.mrb[0].mxu0 %vm149_vm1, %v66_v21  ;;  %641 = vmatmul.mubr.msk.bf16.vlgmr.msra.gmra.mrb[0].mxu1 %vm149_vm1, %v66_v21  ;;  %v771_v46 = vld [vmem:[#allocation8 + $0xb0] sm:$0xff]   ;;  %v773_v48 = vld [vmem:[#allocation8 + $0xf8] sm:$0xff]   ;;  %v82_v58 = vrot.slane %v77_v55, %v81_v53  ;;  %v90_v59 = vrot.slane %v77_v55, %v89_v54  ;;  %v86_v60 = vrot.slane %v77_v55, %v85_v56 }
  0x46   :  { %676 = vmatpush3.bf16.msra.mxu0 %v746_v20  ;;  %698 = vmatpush3.bf16.msra.mxu1 %v747_v22  ;;  %v774_v49 = vld [vmem:[#allocation8 + $0x38] sm:$0xff]   ;;  %v94_v61 = vrot.slane %v77_v55, %v93_v57 }
  0x47   :  { %677 = vmatprep.subr.bf16.mxu0 %v748_v23  ;;  %699 = vmatprep.subr.bf16.mxu1 %v749_v24  ;;  %v775_v50 = vld [vmem:[#allocation8 + $0xb8] sm:$0xff]  }
  0x4a   :  { %678 = vmatpush3.bf16.msra.mxu0 %v750_v25  ;;  %700 = vmatpush3.bf16.msra.mxu1 %v751_v26  ;;  %v642_v25 = vld [vmem:[%s975_s4] ss:$0 sm:$0xff] }
  0x4b   :  { %679 = vmatprep.subr.bf16.mxu0 %v752_v27  ;;  %701 = vmatprep.subr.bf16.mxu1 %v753_v28 }
  0x4e   :  { %680 = vmatpush3.bf16.msra.mxu0 %v754_v29  ;;  %702 = vmatpush3.bf16.msra.mxu1 %v755_v30 }
  0x4f   :  { %681 = vmatprep.subr.bf16.mxu0 %v756_v31  ;;  %703 = vmatprep.subr.bf16.mxu1 %v757_v32 }
  0x52   :  { %682 = vmatpush3.bf16.msra.mxu0 %v758_v33  ;;  %704 = vmatpush3.bf16.msra.mxu1 %v759_v34 }
  0x53   :  { %683 = vmatprep.subr.bf16.mxu0 %v760_v35  ;;  %705 = vmatprep.subr.bf16.mxu1 %v761_v36 }
  0x56   :  { %684 = vmatpush3.bf16.msra.mxu0 %v762_v37  ;;  %706 = vmatpush3.bf16.msra.mxu1 %v763_v38 }
  0x57   :  { %685 = vmatprep.subr.bf16.mxu0 %v764_v39  ;;  %707 = vmatprep.subr.bf16.mxu1 %v765_v40 }
  0x5a   :  { %686 = vmatpush3.bf16.msra.mxu0 %v766_v41  ;;  %708 = vmatpush3.bf16.msra.mxu1 %v767_v42 }
  0x5b   :  { %687 = vmatprep.subr.bf16.mxu0 %v768_v43  ;;  %709 = vmatprep.subr.bf16.mxu1 %v769_v44 }
  0x5e   :  { %688 = vmatpush3.bf16.msra.mxu0 %v770_v45  ;;  %710 = vmatpush3.bf16.msra.mxu1 %v771_v46 }
  0x5f   :  { %689 = vmatprep.subr.bf16.mxu0 %v772_v47  ;;  %711 = vmatprep.subr.bf16.mxu1 %v773_v48 }
  0x62   :  { %690 = vmatpush3.bf16.msra.mxu0 %v774_v49  ;;  %712 = vmatpush3.bf16.msra.mxu1 %v775_v50 }
 0x118   :  { %v200_v62 = vpop.f32.mrb[0].mxu0  ;;  %v241_v0 = vpop.f32.mrb[0].mxu1 }
 0x119   :  { %v201_v1 = vadd.f32 %v200_v62, %v82_v58  ;;  %v242_v2 = vadd.f32 %v241_v0, %v90_v59  ;;  %v202_v3 = vpop.f32.mrb[1].mxu0  ;;  %v243_v4 = vpop.f32.mrb[1].mxu1 }
 0x11a   :  { %v203_v5 = vadd.f32 %v202_v3, %v86_v60  ;;  %v244_v6 = vadd.f32 %v243_v4, %v94_v61  ;;  %v204_v7 = vpop.f32.mrb[2].mxu0  ;;  %v245_v8 = vpop.f32.mrb[2].mxu1 }
 0x11b   :  { %vm249_vm2 = vcmp.ge.f32.partialorder %v201_v1, 0.0  ;;  %v254_v9 = vmul.f32 %v253_v63, %v201_v1  ;;  %vm251_vm3 = vcmp.ge.f32.partialorder %v242_v2, 0.0  ;;  %v256_v10 = vmul.f32 %v253_v63, %v242_v2  ;;  %v205_v11 = vpop.f32.mrb[3].mxu0  ;;  %v246_v12 = vpop.f32.mrb[3].mxu1 }
 0x11c   :  { %vm250_vm4 = vcmp.ge.f32.partialorder %v203_v5, 0.0  ;;  %v255_v13 = vmul.f32 %v253_v63, %v203_v5  ;;  %vm252_vm5 = vcmp.ge.f32.partialorder %v244_v6, 0.0  ;;  %v257_v14 = vmul.f32 %v253_v63, %v244_v6 }
 0x11d   :  { %v258_v15 = vsel %vm249_vm2, %v201_v1, %v254_v9  ;;  %v260_v16 = vsel %vm251_vm3, %v242_v2, %v256_v10 }
 0x11e   :  { %v259_v17 = vsel %vm250_vm4, %v203_v5, %v255_v13  ;;  %v261_v18 = vsel %vm252_vm5, %v244_v6, %v257_v14  ;;  %v262_v21 = vpack.c.bf16 %v258_v15, %v258_v15  ;;  %v264_v22 = vpack.c.bf16 %v260_v16, %v260_v16 }
 0x11f   :  { %v263_v19 = vpack.c.bf16 %v259_v17, %v259_v17  ;;  %v265_v20 = vpack.c.bf16 %v261_v18, %v261_v18 }
 0x121   :  { %561 = vmatprep.mubr.bf16.mxu0 %v263_v19  ;;  %601 = vmatprep.mubr.bf16.mxu1 %v265_v20 }
 0x122   :  { %562 = vmatmul.mubr.bf16.vlgmr.msra.gmra.mrb[4].mxu0 %v262_v21  ;;  %602 = vmatmul.mubr.bf16.vlgmr.msra.gmra.mrb[4].mxu1 %v264_v22 }
 0x1f5   :  { %v691_v23 = vpop.f32.mrb[4].mxu0  ;;  %v713_v24 = vpop.f32.mrb[4].mxu1 }
 0x1f6   :  { %v692_v26 = vpop.f32.mrb[5].mxu0  ;;  %v714_v27 = vpop.f32.mrb[5].mxu1 }
 0x1f7   :  { %v693_v28 = vadd.f32 %v692_v26, %v691_v23  ;;  %v715_v29 = vadd.f32 %v714_v27, %v713_v24  ;;  %v694_v30 = vpop.f32.mrb[6].mxu0  ;;  %v716_v31 = vpop.f32.mrb[6].mxu1 }
 0x1f8   :  { %v695_v32 = vpop.f32.mrb[7].mxu0  ;;  %v717_v33 = vpop.f32.mrb[7].mxu1 }
 0x1f9   :  { %v564_v34 = vadd.f32 %v693_v28, %v642_v25 }
 0x1fb   :  { %v604_v35 = vadd.f32 %v715_v29, %v564_v34 }
 0x1fd   :  { %609 = vst [vmem:[#allocation9] sm:$0xff] %v604_v35 }
 0x1fe   :  { %853 = shalt.err (!%p850_p0)
}
 0x1ff   :  { %s854_s18 = scalar_lea.hbm %s977_s6, 128 }
 0x200   :  { %p855_p1 = scmp.ne.s32.totalorder %s977_s6, %s854_s18  ;;  %p858_p2 = scmp.lt.u32.totalorder %s854_s18, %s977_s6 }
 0x202   :  { %p860_p3 = pnand %p858_p2, %p855_p1 }
 0x204   :  { %863 = shalt.err (!%p860_p3)
}
 0x205   :  { %619 = dma.vmem_to_hbm [thread:$0]  %s617_s15, 128, %s977_s6, [#allocation5]  }
 0x206   :  { %868 = dma.done.wait [#allocation5], 128  }
 0x207   :  { %869 = vsyncadd [#allocation5], 4294967168 }
 0x208   :  { %623 = vsyncpa [#allocation4], 1 }
 0x209   :  { %624 = vsyncpa [#allocation7], 1 }
 0x20a   :  { %625 = vsyncpa [#allocation5], 1 }

</bundles_post_ra>
